<compile_context>
chip_gen: v7x
topology: tpu7x:2x2x1
jax: 0.10.0
libtpu: 0.0.40
codegen_flags: <defaults>
</compile_context>

<pallas_src>
import math
import functools

import jax
import jax.numpy as jnp
from jax import lax
from jax.experimental import pallas as pl
from jax.experimental.pallas import tpu as pltpu


# ---------------------------------------------------------------------------
# Linear projection kernel:  y = x @ W_t + b   (W_t already (d_in, d_out))
# ---------------------------------------------------------------------------
def _linear_kernel(x_ref, w_ref, b_ref, o_ref):
    x = x_ref[...]                       # (tm, d_in)
    w = w_ref[...]                       # (d_in, d_out)  -- pre-transposed
    b = b_ref[...]                       # (1, d_out)
    y = jnp.dot(x, w, preferred_element_type=jnp.float32) + b
    o_ref[...] = y.astype(o_ref.dtype)


def pallas_linear(x, w_t, b, *, out_dtype=None, tm=512):
    M, d_in = x.shape
    d_out = w_t.shape[1]
    out_dtype = out_dtype or x.dtype
    tm = min(tm, M)
    grid_m = pl.cdiv(M, tm)
    return pl.pallas_call(
        _linear_kernel,
        out_shape=jax.ShapeDtypeStruct((M, d_out), out_dtype),
        grid=(grid_m,),
        in_specs=[
            pl.BlockSpec((tm, d_in), lambda i: (i, 0)),
            pl.BlockSpec((d_in, d_out), lambda i: (0, 0)),
            pl.BlockSpec((1, d_out), lambda i: (0, 0)),
        ],
        out_specs=pl.BlockSpec((tm, d_out), lambda i: (i, 0)),
        compiler_params=pltpu.CompilerParams(
            dimension_semantics=("parallel",)),
    )(x, w_t, b.reshape(1, d_out))


# ---------------------------------------------------------------------------
# Attention core kernel. One grid step per (batch, q-tile); ALL heads handled
# inside the step from merged-head (tq, h*d) tiles. Per head hh:
#   att   = (q_h @ k_h.T) / sqrt(d_k)                 (bf16 MXU, f32 acc)
#   w_mn  = softmax(log_box_h + att)                  (log hoisted to wrapper)
#   att2  = softmax(w_mn + ExtrAtt_h)                 (dropout = identity)
#   out_h -> f32 VMEM scratch lane slice [hh*d_v:(hh+1)*d_v]
# Final: single lane-dense (tq, h*d_v) merged-head store.
# ---------------------------------------------------------------------------
def _attn_kernel(q_ref, k_ref, v_ref, lb_ref, ex_ref, o_ref, acc_ref,
                 *, scale, h, d_k, d_v):
    q = q_ref[0]                               # (tq, h*d_k)  bf16
    k = k_ref[0]                               # (nk, h*d_k)  bf16
    v = v_ref[0]                               # (nk, h*d_v)  bf16

    for hh in range(h):                        # static unroll over heads
        qh = q[:, hh * d_k:(hh + 1) * d_k]     # (tq, d_k) static lane slice
        kh = k[:, hh * d_k:(hh + 1) * d_k]     # (nk, d_k)
        vh = v[:, hh * d_v:(hh + 1) * d_v]     # (nk, d_v)

        # QK^T without an explicit transpose: contract dim 1 with dim 1.
        att = lax.dot_general(qh, kh, (((1,), (1,)), ((), ())),
                              preferred_element_type=jnp.float32) * scale

        # softmax(log(clamp(box)) + att); the log is precomputed outside.
        w_mn = lb_ref[0, hh].astype(jnp.float32) + att
        w_mn = w_mn - jnp.max(w_mn, axis=-1, keepdims=True)
        e1 = jnp.exp(w_mn)
        # exact normalization (correctness review): per-row op, not binding.
        p1 = e1 / jnp.sum(e1, axis=-1, keepdims=True)

        # dropout -> identity (eval mode); second softmax over probs + ExtrAtt.
        att2 = p1 + ex_ref[0, hh].astype(jnp.float32)
        att2 = att2 - jnp.max(att2, axis=-1, keepdims=True)
        e2 = jnp.exp(att2)
        p2 = e2 / jnp.sum(e2, axis=-1, keepdims=True)

        # PV on the MXU in bf16, f32 accumulate; stream straight into scratch.
        acc_ref[:, hh * d_v:(hh + 1) * d_v] = jnp.dot(
            p2.astype(vh.dtype), vh, preferred_element_type=jnp.float32)

    # Single lane-dense merged-head store.
    o_ref[0] = acc_ref[...].astype(o_ref.dtype)


# ---------------------------------------------------------------------------
# Tile-size / VMEM budgeting helpers.
# ---------------------------------------------------------------------------
def _attn_vmem_bytes(tq, nk, h, d_k, d_v, act_bytes, bias_bytes):
    q_t = tq * h * d_k * act_bytes
    k_t = nk * h * d_k * act_bytes
    v_t = nk * h * d_v * act_bytes
    o_t = tq * h * d_v * act_bytes
    b_t = 2 * h * tq * nk * bias_bytes          # both bias tensors
    scratch = tq * h * d_v * 4                  # f32 accumulator
    # inputs/outputs double-buffered; biases assumed up to triple-buffered.
    return 2 * (q_t + k_t + v_t + o_t) + 3 * b_t + scratch


def _choose_tq(nq, nk, h, d_k, d_v, act_bytes, bias_bytes,
               budget_bytes=28 * 2**20, target=256):
    tq = nq if nq <= target else max(8, (target // 8) * 8)
    while tq > 8 and _attn_vmem_bytes(tq, nk, h, d_k, d_v,
                                      act_bytes, bias_bytes) > budget_bytes:
        tq = max(8, tq // 2)
    return tq


# ---------------------------------------------------------------------------
# Full forward pass.
# ---------------------------------------------------------------------------
def scaled_dot_product_with_box_extr_att(params, queries, keys, values,
                                         box_relation_embed_matrix, extr_att,
                                         attention_mask=None,
                                         attention_weights=None,
                                         *, compute_dtype=jnp.bfloat16,
                                         bias_dtype=jnp.bfloat16):
    if attention_mask is not None or attention_weights is not None:
        # TODO(synk): attention_mask / attention_weights not wired in.
        raise NotImplementedError("attention_mask / attention_weights")

    b_s, nq, d_model = queries.shape
    nk = keys.shape[1]
    h, d_k, d_v = params["h"], params["d_k"], params["d_v"]

    # Pre-transpose weights once (XLA, hoisted under jit) -> plain (M,K)@(K,N)
    # dots in the linear kernel, no hidden per-grid-step transpose.
    wq_t = params["wq"].T
    wk_t = params["wk"].T
    wv_t = params["wv"].T
    wo_t = params["wo"].T

    # Projections (tiled Pallas matmuls). Merged-head layout (b_s, seq, h*d)
    # in bf16: no HBM transposes before/after attention, half the activation
    # bytes, bf16-native MXU matmuls in the attention kernel.
    q = pallas_linear(queries.reshape(b_s * nq, d_model), wq_t, params["bq"],
                      out_dtype=compute_dtype).reshape(b_s, nq, h * d_k)
    if keys is values:
        # Fused K/V projection: one pass over the keys activation.
        wkv_t = jnp.concatenate([wk_t, wv_t], axis=1)
        bkv = jnp.concatenate([params["bk"], params["bv"]], axis=0)
        kv = pallas_linear(keys.reshape(b_s * nk, d_model), wkv_t, bkv,
                           out_dtype=compute_dtype)
        k = kv[:, :h * d_k].reshape(b_s, nk, h * d_k)
        v = kv[:, h * d_k:].reshape(b_s, nk, h * d_v)
    else:
        k = pallas_linear(keys.reshape(b_s * nk, d_model), wk_t, params["bk"],
                          out_dtype=compute_dtype).reshape(b_s, nk, h * d_k)
        v = pallas_linear(values.reshape(b_s * nk, d_model), wv_t, params["bv"],
                          out_dtype=compute_dtype).reshape(b_s, nk, h * d_v)

    # Hoist log(clamp(box, 1e-6)) out of the kernel; ship both biases in bf16
    # (they dominate the attention kernel's HBM traffic at realistic sizes).
    log_box = jnp.log(jnp.maximum(
        box_relation_embed_matrix.astype(jnp.float32), 1e-6)).astype(bias_dtype)
    extr_b = extr_att.astype(bias_dtype)

    act_bytes = jnp.dtype(compute_dtype).itemsize
    bias_bytes = jnp.dtype(bias_dtype).itemsize
    tq = _choose_tq(nq, nk, h, d_k, d_v, act_bytes, bias_bytes)
    grid_q = pl.cdiv(nq, tq)

    vmem_need = _attn_vmem_bytes(tq, nk, h, d_k, d_v, act_bytes, bias_bytes)
    vmem_limit = int(min(64 * 2**20, max(32 * 2**20, int(vmem_need * 1.5))))

    # Deeper buffering on the large bias streams once there are enough grid
    # steps to pipeline (review: only worth it with many steps).
    bias_kwargs = {}
    if b_s * grid_q >= 8:
        bias_kwargs["pipeline_mode"] = pl.Buffered(3)

    scale = 1.0 / math.sqrt(d_k)
    kernel = functools.partial(_attn_kernel, scale=scale, h=h, d_k=d_k, d_v=d_v)

    out_merged = pl.pallas_call(
        kernel,
        out_shape=jax.ShapeDtypeStruct((b_s, nq, h * d_v), compute_dtype),
        grid=(b_s, grid_q),
        in_specs=[
            pl.BlockSpec((1, tq, h * d_k), lambda b, i: (b, i, 0)),
            pl.BlockSpec((1, nk, h * d_k), lambda b, i: (b, 0, 0)),
            pl.BlockSpec((1, nk, h * d_v), lambda b, i: (b, 0, 0)),
            pl.BlockSpec((1, h, tq, nk), lambda b, i: (b, 0, i, 0),
                         **bias_kwargs),
            pl.BlockSpec((1, h, tq, nk), lambda b, i: (b, 0, i, 0),
                         **bias_kwargs),
        ],
        out_specs=pl.BlockSpec((1, tq, h * d_v), lambda b, i: (b, i, 0)),
        scratch_shapes=[pltpu.VMEM((tq, h * d_v), jnp.float32)],
        compiler_params=pltpu.CompilerParams(
            dimension_semantics=("parallel", "parallel"),
            vmem_limit_bytes=vmem_limit),
    )(q, k, v, log_box, extr_b)

    # Output projection straight from the merged-head slab (free reshape);
    # restore the original activation dtype.
    out = pallas_linear(out_merged.reshape(b_s * nq, h * d_v), wo_t,
                        params["bo"], out_dtype=queries.dtype)
    return out.reshape(b_s, nq, d_model)


# ---------------------------------------------------------------------------
# Deterministic parameter init (xavier_uniform weights in PyTorch (out,in)
# layout, zero biases) -- layout matches nn.Linear for easy weight porting.
# ---------------------------------------------------------------------------
def xavier_uniform(key, out_f, in_f, dtype=jnp.float32):
    bound = math.sqrt(6.0 / (in_f + out_f))
    return jax.random.uniform(key, (out_f, in_f), dtype, -bound, bound)


def init_params(key, d_model, d_k, d_v, h):
    k0, k1, k2, k3 = jax.random.split(key, 4)
    return {
        "h": h, "d_k": d_k, "d_v": d_v,
        "wq": xavier_uniform(k0, h * d_k, d_model),
        "bq": jnp.zeros((h * d_k,), jnp.float32),
        "wk": xavier_uniform(k1, h * d_k, d_model),
        "bk": jnp.zeros((h * d_k,), jnp.float32),
        "wv": xavier_uniform(k2, h * d_v, d_model),
        "bv": jnp.zeros((h * d_v,), jnp.float32),
        "wo": xavier_uniform(k3, d_model, h * d_v),
        "bo": jnp.zeros((d_model,), jnp.float32),
    }


if __name__ == "__main__":
    d_model, d_k, d_v, h = 32, 16, 16, 4
    b_s, nq, nk = 2, 8, 8

    root = jax.random.PRNGKey(0)
    kp, kq, kk, kv, kb, ke = jax.random.split(root, 6)

    params = init_params(kp, d_model, d_k, d_v, h)

    queries = jax.random.normal(kq, (b_s, nq, d_model), jnp.float32)
    keys_in = jax.random.normal(kk, (b_s, nk, d_model), jnp.float32)
    values = jax.random.normal(kv, (b_s, nk, d_model), jnp.float32)
    # box relation embeds are non-negative geometric weights in DLCT
    box = jax.random.uniform(kb, (b_s, h, nq, nk), jnp.float32, 0.0, 2.0)
    extr = 0.1 * jax.random.normal(ke, (b_s, h, nq, nk), jnp.float32)

    @jax.jit
    def run(q_, k_, v_, box_, extr_):
        return scaled_dot_product_with_box_extr_att(
            params, q_, k_, v_, box_, extr_)

    out = run(queries, keys_in, values, box, extr)
    jax.block_until_ready(out)

    assert out.shape == (b_s, nq, d_model)
    assert out.dtype == queries.dtype
    assert bool(jnp.all(jnp.isfinite(out)))
    print("KERNEL_OK")
</pallas_src>

<mosaic_0001>
module attributes {stable_mosaic.version = 11 : i64} {
  func.func @_linear_kernel(%arg0: i32, %arg1: memref<16x32xf32, #tpu.memory_space<vmem>>, %arg2: memref<32x64xf32, #tpu.memory_space<vmem>>, %arg3: memref<1x64xf32, #tpu.memory_space<vmem>>, %arg4: memref<16x64xbf16, #tpu.memory_space<vmem>>) attributes {dimension_semantics = [#tpu.dimension_semantics<parallel>], iteration_bounds = array<i64: 1>, scalar_prefetch = 0 : i64, scratch_operands = 0 : i64, tpu.core_type = #tpu.core_type<tc>, window_params = [{transform_indices = @transform_0, window_bounds = array<i64: 16, 32>}, {pipeline_mode = #tpu.pipeline_mode<synchronous>, transform_indices = @transform_1, window_bounds = array<i64: 32, 64>}, {pipeline_mode = #tpu.pipeline_mode<synchronous>, transform_indices = @transform_2, window_bounds = array<i64: 1, 64>}, {transform_indices = @transform_3, window_bounds = array<i64: 16, 64>}]} {
    %c0 = arith.constant 0 : index
    %c0_0 = arith.constant 0 : index
    %0 = vector.load %arg1[%c0, %c0_0] : memref<16x32xf32, #tpu.memory_space<vmem>>, vector<16x32xf32>
    %c0_1 = arith.constant 0 : index
    %c0_2 = arith.constant 0 : index
    %1 = vector.load %arg2[%c0_1, %c0_2] : memref<32x64xf32, #tpu.memory_space<vmem>>, vector<32x64xf32>
    %c0_3 = arith.constant 0 : index
    %c0_4 = arith.constant 0 : index
    %2 = vector.load %arg3[%c0_3, %c0_4] : memref<1x64xf32, #tpu.memory_space<vmem>>, vector<1x64xf32>
    %cst = arith.constant dense<0.000000e+00> : vector<16x64xf32>
    %3 = tpu.matmul %0, %1, %cst {dimension_numbers = #tpu.dot_dimension_numbers<[1], [0], [0], [1], [0, 0, 1, 1], [], []>} : vector<16x32xf32>, vector<32x64xf32>, vector<16x64xf32> -> vector<16x64xf32>
    %4 = vector.broadcast %2 : vector<1x64xf32> to vector<16x64xf32>
    %5 = arith.addf %3, %4 : vector<16x64xf32>
    %6 = arith.truncf %5 : vector<16x64xf32> to vector<16x64xbf16>
    %c0_5 = arith.constant 0 : index
    %c0_6 = arith.constant 0 : index
    %7 = vector.load %arg4[%c0_5, %c0_6] : memref<16x64xbf16, #tpu.memory_space<vmem>>, vector<16x64xbf16>
    tpu.vector_store %arg4[%c0_5, %c0_6], %6 {strides = array<i32>} : memref<16x64xbf16, #tpu.memory_space<vmem>>, vector<16x64xbf16>,
    return
  }
  func.func @transform_0(%arg0: i32) -> (i32, i32) {
    %c0_i32 = arith.constant 0 : i32
    %c0_i32_0 = arith.constant 0 : i32
    return %arg0, %c0_i32 : i32, i32
  }
  func.func @transform_1(%arg0: i32) -> (i32, i32) {
    %c0_i32 = arith.constant 0 : i32
    %c0_i32_0 = arith.constant 0 : i32
    %c0_i32_1 = arith.constant 0 : i32
    return %c0_i32, %c0_i32_0 : i32, i32
  }
  func.func @transform_2(%arg0: i32) -> (i32, i32) {
    %c0_i32 = arith.constant 0 : i32
    %c0_i32_0 = arith.constant 0 : i32
    %c0_i32_1 = arith.constant 0 : i32
    return %c0_i32, %c0_i32_0 : i32, i32
  }
  func.func @transform_3(%arg0: i32) -> (i32, i32) {
    %c0_i32 = arith.constant 0 : i32
    %c0_i32_0 = arith.constant 0 : i32
    return %arg0, %c0_i32 : i32, i32
  }
}

module attributes {stable_mosaic.version = 11 : i64} {
  func.func @_linear_kernel(%arg0: i32, %arg1: memref<16x32xf32, #tpu.memory_space<vmem>>, %arg2: memref<32x64xf32, #tpu.memory_space<vmem>>, %arg3: memref<1x64xf32, #tpu.memory_space<vmem>>, %arg4: memref<16x64xbf16, #tpu.memory_space<vmem>>) attributes {dimension_semantics = [#tpu.dimension_semantics<parallel>], iteration_bounds = array<i64: 1>, scalar_prefetch = 0 : i64, scratch_operands = 0 : i64, tpu.core_type = #tpu.core_type<tc>, window_params = [{transform_indices = @transform_0, window_bounds = array<i64: 16, 32>}, {pipeline_mode = #tpu.pipeline_mode<synchronous>, transform_indices = @transform_1, window_bounds = array<i64: 32, 64>}, {pipeline_mode = #tpu.pipeline_mode<synchronous>, transform_indices = @transform_2, window_bounds = array<i64: 1, 64>}, {transform_indices = @transform_3, window_bounds = array<i64: 16, 64>}]} {
    %c0 = arith.constant 0 : index
    %c0_0 = arith.constant 0 : index
    %0 = vector.load %arg1[%c0, %c0_0] : memref<16x32xf32, #tpu.memory_space<vmem>>, vector<16x32xf32>
    %c0_1 = arith.constant 0 : index
    %c0_2 = arith.constant 0 : index
    %1 = vector.load %arg2[%c0_1, %c0_2] : memref<32x64xf32, #tpu.memory_space<vmem>>, vector<32x64xf32>
    %c0_3 = arith.constant 0 : index
    %c0_4 = arith.constant 0 : index
    %2 = vector.load %arg3[%c0_3, %c0_4] : memref<1x64xf32, #tpu.memory_space<vmem>>, vector<1x64xf32>
    %cst = arith.constant dense<0.000000e+00> : vector<16x64xf32>
    %3 = tpu.matmul %0, %1, %cst {dimension_numbers = #tpu.dot_dimension_numbers<[1], [0], [0], [1], [0, 0, 1, 1], [], []>} : vector<16x32xf32>, vector<32x64xf32>, vector<16x64xf32> -> vector<16x64xf32>
    %4 = vector.broadcast %2 : vector<1x64xf32> to vector<16x64xf32>
    %5 = arith.addf %3, %4 : vector<16x64xf32>
    %6 = arith.truncf %5 : vector<16x64xf32> to vector<16x64xbf16>
    %c0_5 = arith.constant 0 : index
    %c0_6 = arith.constant 0 : index
    %7 = vector.load %arg4[%c0_5, %c0_6] : memref<16x64xbf16, #tpu.memory_space<vmem>>, vector<16x64xbf16>
    tpu.vector_store %arg4[%c0_5, %c0_6], %6 {strides = array<i32>} : memref<16x64xbf16, #tpu.memory_space<vmem>>, vector<16x64xbf16>,
    return
  }
  func.func @transform_0(%arg0: i32) -> (i32, i32) {
    %c0_i32 = arith.constant 0 : i32
    %c0_i32_0 = arith.constant 0 : i32
    return %arg0, %c0_i32 : i32, i32
  }
  func.func @transform_1(%arg0: i32) -> (i32, i32) {
    %c0_i32 = arith.constant 0 : i32
    %c0_i32_0 = arith.constant 0 : i32
    %c0_i32_1 = arith.constant 0 : i32
    return %c0_i32, %c0_i32_0 : i32, i32
  }
  func.func @transform_2(%arg0: i32) -> (i32, i32) {
    %c0_i32 = arith.constant 0 : i32
    %c0_i32_0 = arith.constant 0 : i32
    %c0_i32_1 = arith.constant 0 : i32
    return %c0_i32, %c0_i32_0 : i32, i32
  }
  func.func @transform_3(%arg0: i32) -> (i32, i32) {
    %c0_i32 = arith.constant 0 : i32
    %c0_i32_0 = arith.constant 0 : i32
    return %arg0, %c0_i32 : i32, i32
  }
}

module attributes {stable_mosaic.version = 11 : i64} {
  func.func @_attn_kernel(%arg0: i32, %arg1: i32, %arg2: memref<1x8x64xbf16, #tpu.memory_space<vmem>>, %arg3: memref<1x8x64xbf16, #tpu.memory_space<vmem>>, %arg4: memref<1x8x64xbf16, #tpu.memory_space<vmem>>, %arg5: memref<1x4x8x8xbf16, #tpu.memory_space<vmem>>, %arg6: memref<1x4x8x8xbf16, #tpu.memory_space<vmem>>, %arg7: memref<1x8x64xbf16, #tpu.memory_space<vmem>>, %arg8: memref<8x64xf32, #tpu.memory_space<vmem>>) attributes {dimension_semantics = [#tpu.dimension_semantics<parallel>, #tpu.dimension_semantics<parallel>], iteration_bounds = array<i64: 2, 1>, scalar_prefetch = 0 : i64, scratch_operands = 1 : i64, tpu.core_type = #tpu.core_type<tc>, window_params = [{transform_indices = @transform_0, window_bounds = array<i64: 1, 8, 64>}, {transform_indices = @transform_1, window_bounds = array<i64: 1, 8, 64>}, {transform_indices = @transform_2, window_bounds = array<i64: 1, 8, 64>}, {transform_indices = @transform_3, window_bounds = array<i64: 1, 4, 8, 8>}, {transform_indices = @transform_4, window_bounds = array<i64: 1, 4, 8, 8>}, {transform_indices = @transform_5, window_bounds = array<i64: 1, 8, 64>}]} {
    %c0 = arith.constant 0 : index
    %c0_0 = arith.constant 0 : index
    %c0_1 = arith.constant 0 : index
    %0 = vector.load %arg2[%c0, %c0_0, %c0_1] : memref<1x8x64xbf16, #tpu.memory_space<vmem>>, vector<1x8x64xbf16>
    %1 = vector.shape_cast %0 : vector<1x8x64xbf16> to vector<8x64xbf16>
    %c0_2 = arith.constant 0 : index
    %c0_3 = arith.constant 0 : index
    %c0_4 = arith.constant 0 : index
    %2 = vector.load %arg3[%c0_2, %c0_3, %c0_4] : memref<1x8x64xbf16, #tpu.memory_space<vmem>>, vector<1x8x64xbf16>
    %3 = vector.shape_cast %2 : vector<1x8x64xbf16> to vector<8x64xbf16>
    %c0_5 = arith.constant 0 : index
    %c0_6 = arith.constant 0 : index
    %c0_7 = arith.constant 0 : index
    %4 = vector.load %arg4[%c0_5, %c0_6, %c0_7] : memref<1x8x64xbf16, #tpu.memory_space<vmem>>, vector<1x8x64xbf16>
    %5 = vector.shape_cast %4 : vector<1x8x64xbf16> to vector<8x64xbf16>
    %6 = vector.extract_strided_slice %1 {offsets = [0, 0], sizes = [8, 16], strides = [1, 1]} : vector<8x64xbf16> to vector<8x16xbf16>
    %7 = vector.extract_strided_slice %3 {offsets = [0, 0], sizes = [8, 16], strides = [1, 1]} : vector<8x64xbf16> to vector<8x16xbf16>
    %8 = vector.extract_strided_slice %5 {offsets = [0, 0], sizes = [8, 16], strides = [1, 1]} : vector<8x64xbf16> to vector<8x16xbf16>
    %cst = arith.constant dense<0.000000e+00> : vector<8x8xf32>
    %9 = tpu.matmul %6, %7, %cst {dimension_numbers = #tpu.dot_dimension_numbers<[1], [1], [0], [0], [0, 0, 1, 0], [], []>} : vector<8x16xbf16>, vector<8x16xbf16>, vector<8x8xf32> -> vector<8x8xf32>
    %cst_8 = arith.constant 2.500000e-01 : f32
    %10 = vector.broadcast %cst_8 : f32 to vector<8x8xf32>
    %11 = arith.mulf %9, %10 : vector<8x8xf32>
    %c0_9 = arith.constant 0 : index
    %c0_10 = arith.constant 0 : index
    %c0_11 = arith.constant 0 : index
    %c0_12 = arith.constant 0 : index
    %12 = vector.load %arg5[%c0_9, %c0_10, %c0_11, %c0_12] : memref<1x4x8x8xbf16, #tpu.memory_space<vmem>>, vector<1x1x8x8xbf16>
    %13 = vector.shape_cast %12 : vector<1x1x8x8xbf16> to vector<8x8xbf16>
    %14 = arith.extf %13 : vector<8x8xbf16> to vector<8x8xf32>
    %15 = arith.addf %14, %11 : vector<8x8xf32>
    %cst_13 = arith.constant dense<0xFF800000> : vector<8xf32>
    %16 = vector.multi_reduction <maximumf>, %15, %cst_13 [1] : vector<8x8xf32> to vector<8xf32>
    %17 = vector.shape_cast %16 : vector<8xf32> to vector<8x1xf32>
    %18 = vector.broadcast %17 : vector<8x1xf32> to vector<8x8xf32>
    %19 = arith.subf %15, %18 : vector<8x8xf32>
    %20 = math.exp %19 : vector<8x8xf32>
    %cst_14 = arith.constant dense<0.000000e+00> : vector<8xf32>
    %21 = vector.multi_reduction <add>, %20, %cst_14 [1] : vector<8x8xf32> to vector<8xf32>
    %22 = vector.shape_cast %21 : vector<8xf32> to vector<8x1xf32>
    %23 = vector.broadcast %22 : vector<8x1xf32> to vector<8x8xf32>
    %24 = arith.divf %20, %23 : vector<8x8xf32>
    %c0_15 = arith.constant 0 : index
    %c0_16 = arith.constant 0 : index
    %c0_17 = arith.constant 0 : index
    %c0_18 = arith.constant 0 : index
    %25 = vector.load %arg6[%c0_15, %c0_16, %c0_17, %c0_18] : memref<1x4x8x8xbf16, #tpu.memory_space<vmem>>, vector<1x1x8x8xbf16>
    %26 = vector.shape_cast %25 : vector<1x1x8x8xbf16> to vector<8x8xbf16>
    %27 = arith.extf %26 : vector<8x8xbf16> to vector<8x8xf32>
    %28 = arith.addf %24, %27 : vector<8x8xf32>
    %cst_19 = arith.constant dense<0xFF800000> : vector<8xf32>
    %29 = vector.multi_reduction <maximumf>, %28, %cst_19 [1] : vector<8x8xf32> to vector<8xf32>
    %30 = vector.shape_cast %29 : vector<8xf32> to vector<8x1xf32>
    %31 = vector.broadcast %30 : vector<8x1xf32> to vector<8x8xf32>
    %32 = arith.subf %28, %31 : vector<8x8xf32>
    %33 = math.exp %32 : vector<8x8xf32>
    %cst_20 = arith.constant dense<0.000000e+00> : vector<8xf32>
    %34 = vector.multi_reduction <add>, %33, %cst_20 [1] : vector<8x8xf32> to vector<8xf32>
    %35 = vector.shape_cast %34 : vector<8xf32> to vector<8x1xf32>
    %36 = vector.broadcast %35 : vector<8x1xf32> to vector<8x8xf32>
    %37 = arith.divf %33, %36 : vector<8x8xf32>
    %38 = arith.truncf %37 : vector<8x8xf32> to vector<8x8xbf16>
    %cst_21 = arith.constant dense<0.000000e+00> : vector<8x16xf32>
    %39 = tpu.matmul %38, %8, %cst_21 {dimension_numbers = #tpu.dot_dimension_numbers<[1], [0], [0], [1], [0, 0, 1, 1], [], []>} : vector<8x8xbf16>, vector<8x16xbf16>, vector<8x16xf32> -> vector<8x16xf32>
    %c0_22 = arith.constant 0 : index
    %c0_23 = arith.constant 0 : index
    %40 = vector.load %arg8[%c0_22, %c0_23] : memref<8x64xf32, #tpu.memory_space<vmem>>, vector<8x16xf32>
    tpu.vector_store %arg8[%c0_22, %c0_23], %39 {strides = array<i32>} : memref<8x64xf32, #tpu.memory_space<vmem>>, vector<8x16xf32>,
    %41 = vector.extract_strided_slice %1 {offsets = [0, 16], sizes = [8, 16], strides = [1, 1]} : vector<8x64xbf16> to vector<8x16xbf16>
    %42 = vector.extract_strided_slice %3 {offsets = [0, 16], sizes = [8, 16], strides = [1, 1]} : vector<8x64xbf16> to vector<8x16xbf16>
    %43 = vector.extract_strided_slice %5 {offsets = [0, 16], sizes = [8, 16], strides = [1, 1]} : vector<8x64xbf16> to vector<8x16xbf16>
    %cst_24 = arith.constant dense<0.000000e+00> : vector<8x8xf32>
    %44 = tpu.matmul %41, %42, %cst_24 {dimension_numbers = #tpu.dot_dimension_numbers<[1], [1], [0], [0], [0, 0, 1, 0], [], []>} : vector<8x16xbf16>, vector<8x16xbf16>, vector<8x8xf32> -> vector<8x8xf32>
    %cst_25 = arith.constant 2.500000e-01 : f32
    %45 = vector.broadcast %cst_25 : f32 to vector<8x8xf32>
    %46 = arith.mulf %44, %45 : vector<8x8xf32>
    %c0_26 = arith.constant 0 : index
    %c1 = arith.constant 1 : index
    %c0_27 = arith.constant 0 : index
    %c0_28 = arith.constant 0 : index
    %47 = vector.load %arg5[%c0_26, %c1, %c0_27, %c0_28] : memref<1x4x8x8xbf16, #tpu.memory_space<vmem>>, vector<1x1x8x8xbf16>
    %48 = vector.shape_cast %47 : vector<1x1x8x8xbf16> to vector<8x8xbf16>
    %49 = arith.extf %48 : vector<8x8xbf16> to vector<8x8xf32>
    %50 = arith.addf %49, %46 : vector<8x8xf32>
    %cst_29 = arith.constant dense<0xFF800000> : vector<8xf32>
    %51 = vector.multi_reduction <maximumf>, %50, %cst_29 [1] : vector<8x8xf32> to vector<8xf32>
    %52 = vector.shape_cast %51 : vector<8xf32> to vector<8x1xf32>
    %53 = vector.broadcast %52 : vector<8x1xf32> to vector<8x8xf32>
    %54 = arith.subf %50, %53 : vector<8x8xf32>
    %55 = math.exp %54 : vector<8x8xf32>
    %cst_30 = arith.constant dense<0.000000e+00> : vector<8xf32>
    %56 = vector.multi_reduction <add>, %55, %cst_30 [1] : vector<8x8xf32> to vector<8xf32>
    %57 = vector.shape_cast %56 : vector<8xf32> to vector<8x1xf32>
    %58 = vector.broadcast %57 : vector<8x1xf32> to vector<8x8xf32>
    %59 = arith.divf %55, %58 : vector<8x8xf32>
    %c0_31 = arith.constant 0 : index
    %c1_32 = arith.constant 1 : index
    %c0_33 = arith.constant 0 : index
    %c0_34 = arith.constant 0 : index
    %60 = vector.load %arg6[%c0_31, %c1_32, %c0_33, %c0_34] : memref<1x4x8x8xbf16, #tpu.memory_space<vmem>>, vector<1x1x8x8xbf16>
    %61 = vector.shape_cast %60 : vector<1x1x8x8xbf16> to vector<8x8xbf16>
    %62 = arith.extf %61 : vector<8x8xbf16> to vector<8x8xf32>
    %63 = arith.addf %59, %62 : vector<8x8xf32>
    %cst_35 = arith.constant dense<0xFF800000> : vector<8xf32>
    %64 = vector.multi_reduction <maximumf>, %63, %cst_35 [1] : vector<8x8xf32> to vector<8xf32>
    %65 = vector.shape_cast %64 : vector<8xf32> to vector<8x1xf32>
    %66 = vector.broadcast %65 : vector<8x1xf32> to vector<8x8xf32>
    %67 = arith.subf %63, %66 : vector<8x8xf32>
    %68 = math.exp %67 : vector<8x8xf32>
    %cst_36 = arith.constant dense<0.000000e+00> : vector<8xf32>
    %69 = vector.multi_reduction <add>, %68, %cst_36 [1] : vector<8x8xf32> to vector<8xf32>
    %70 = vector.shape_cast %69 : vector<8xf32> to vector<8x1xf32>
    %71 = vector.broadcast %70 : vector<8x1xf32> to vector<8x8xf32>
    %72 = arith.divf %68, %71 : vector<8x8xf32>
    %73 = arith.truncf %72 : vector<8x8xf32> to vector<8x8xbf16>
    %cst_37 = arith.constant dense<0.000000e+00> : vector<8x16xf32>
    %74 = tpu.matmul %73, %43, %cst_37 {dimension_numbers = #tpu.dot_dimension_numbers<[1], [0], [0], [1], [0, 0, 1, 1], [], []>} : vector<8x8xbf16>, vector<8x16xbf16>, vector<8x16xf32> -> vector<8x16xf32>
    %c0_38 = arith.constant 0 : index
    %c16 = arith.constant 16 : index
    %75 = vector.load %arg8[%c0_38, %c16] : memref<8x64xf32, #tpu.memory_space<vmem>>, vector<8x16xf32>
    tpu.vector_store %arg8[%c0_38, %c16], %74 {strides = array<i32>} : memref<8x64xf32, #tpu.memory_space<vmem>>, vector<8x16xf32>,
    %76 = vector.extract_strided_slice %1 {offsets = [0, 32], sizes = [8, 16], strides = [1, 1]} : vector<8x64xbf16> to vector<8x16xbf16>
    %77 = vector.extract_strided_slice %3 {offsets = [0, 32], sizes = [8, 16], strides = [1, 1]} : vector<8x64xbf16> to vector<8x16xbf16>
    %78 = vector.extract_strided_slice %5 {offsets = [0, 32], sizes = [8, 16], strides = [1, 1]} : vector<8x64xbf16> to vector<8x16xbf16>
    %cst_39 = arith.constant dense<0.000000e+00> : vector<8x8xf32>
    %79 = tpu.matmul %76, %77, %cst_39 {dimension_numbers = #tpu.dot_dimension_numbers<[1], [1], [0], [0], [0, 0, 1, 0], [], []>} : vector<8x16xbf16>, vector<8x16xbf16>, vector<8x8xf32> -> vector<8x8xf32>
    %cst_40 = arith.constant 2.500000e-01 : f32
    %80 = vector.broadcast %cst_40 : f32 to vector<8x8xf32>
    %81 = arith.mulf %79, %80 : vector<8x8xf32>
    %c0_41 = arith.constant 0 : index
    %c2 = arith.constant 2 : index
    %c0_42 = arith.constant 0 : index
    %c0_43 = arith.constant 0 : index
    %82 = vector.load %arg5[%c0_41, %c2, %c0_42, %c0_43] : memref<1x4x8x8xbf16, #tpu.memory_space<vmem>>, vector<1x1x8x8xbf16>
    %83 = vector.shape_cast %82 : vector<1x1x8x8xbf16> to vector<8x8xbf16>
    %84 = arith.extf %83 : vector<8x8xbf16> to vector<8x8xf32>
    %85 = arith.addf %84, %81 : vector<8x8xf32>
    %cst_44 = arith.constant dense<0xFF800000> : vector<8xf32>
    %86 = vector.multi_reduction <maximumf>, %85, %cst_44 [1] : vector<8x8xf32> to vector<8xf32>
    %87 = vector.shape_cast %86 : vector<8xf32> to vector<8x1xf32>
    %88 = vector.broadcast %87 : vector<8x1xf32> to vector<8x8xf32>
    %89 = arith.subf %85, %88 : vector<8x8xf32>
    %90 = math.exp %89 : vector<8x8xf32>
    %cst_45 = arith.constant dense<0.000000e+00> : vector<8xf32>
    %91 = vector.multi_reduction <add>, %90, %cst_45 [1] : vector<8x8xf32> to vector<8xf32>
    %92 = vector.shape_cast %91 : vector<8xf32> to vector<8x1xf32>
    %93 = vector.broadcast %92 : vector<8x1xf32> to vector<8x8xf32>
    %94 = arith.divf %90, %93 : vector<8x8xf32>
    %c0_46 = arith.constant 0 : index
    %c2_47 = arith.constant 2 : index
    %c0_48 = arith.constant 0 : index
    %c0_49 = arith.constant 0 : index
    %95 = vector.load %arg6[%c0_46, %c2_47, %c0_48, %c0_49] : memref<1x4x8x8xbf16, #tpu.memory_space<vmem>>, vector<1x1x8x8xbf16>
    %96 = vector.shape_cast %95 : vector<1x1x8x8xbf16> to vector<8x8xbf16>
    %97 = arith.extf %96 : vector<8x8xbf16> to vector<8x8xf32>
    %98 = arith.addf %94, %97 : vector<8x8xf32>
    %cst_50 = arith.constant dense<0xFF800000> : vector<8xf32>
    %99 = vector.multi_reduction <maximumf>, %98, %cst_50 [1] : vector<8x8xf32> to vector<8xf32>
    %100 = vector.shape_cast %99 : vector<8xf32> to vector<8x1xf32>
    %101 = vector.broadcast %100 : vector<8x1xf32> to vector<8x8xf32>
    %102 = arith.subf %98, %101 : vector<8x8xf32>
    %103 = math.exp %102 : vector<8x8xf32>
    %cst_51 = arith.constant dense<0.000000e+00> : vector<8xf32>
    %104 = vector.multi_reduction <add>, %103, %cst_51 [1] : vector<8x8xf32> to vector<8xf32>
    %105 = vector.shape_cast %104 : vector<8xf32> to vector<8x1xf32>
    %106 = vector.broadcast %105 : vector<8x1xf32> to vector<8x8xf32>
    %107 = arith.divf %103, %106 : vector<8x8xf32>
    %108 = arith.truncf %107 : vector<8x8xf32> to vector<8x8xbf16>
    %cst_52 = arith.constant dense<0.000000e+00> : vector<8x16xf32>
    %109 = tpu.matmul %108, %78, %cst_52 {dimension_numbers = #tpu.dot_dimension_numbers<[1], [0], [0], [1], [0, 0, 1, 1], [], []>} : vector<8x8xbf16>, vector<8x16xbf16>, vector<8x16xf32> -> vector<8x16xf32>
    %c0_53 = arith.constant 0 : index
    %c32 = arith.constant 32 : index
    %110 = vector.load %arg8[%c0_53, %c32] : memref<8x64xf32, #tpu.memory_space<vmem>>, vector<8x16xf32>
    tpu.vector_store %arg8[%c0_53, %c32], %109 {strides = array<i32>} : memref<8x64xf32, #tpu.memory_space<vmem>>, vector<8x16xf32>,
    %111 = vector.extract_strided_slice %1 {offsets = [0, 48], sizes = [8, 16], strides = [1, 1]} : vector<8x64xbf16> to vector<8x16xbf16>
    %112 = vector.extract_strided_slice %3 {offsets = [0, 48], sizes = [8, 16], strides = [1, 1]} : vector<8x64xbf16> to vector<8x16xbf16>
    %113 = vector.extract_strided_slice %5 {offsets = [0, 48], sizes = [8, 16], strides = [1, 1]} : vector<8x64xbf16> to vector<8x16xbf16>
    %cst_54 = arith.constant dense<0.000000e+00> : vector<8x8xf32>
    %114 = tpu.matmul %111, %112, %cst_54 {dimension_numbers = #tpu.dot_dimension_numbers<[1], [1], [0], [0], [0, 0, 1, 0], [], []>} : vector<8x16xbf16>, vector<8x16xbf16>, vector<8x8xf32> -> vector<8x8xf32>
    %cst_55 = arith.constant 2.500000e-01 : f32
    %115 = vector.broadcast %cst_55 : f32 to vector<8x8xf32>
    %116 = arith.mulf %114, %115 : vector<8x8xf32>
    %c0_56 = arith.constant 0 : index
    %c3 = arith.constant 3 : index
    %c0_57 = arith.constant 0 : index
    %c0_58 = arith.constant 0 : index
    %117 = vector.load %arg5[%c0_56, %c3, %c0_57, %c0_58] : memref<1x4x8x8xbf16, #tpu.memory_space<vmem>>, vector<1x1x8x8xbf16>
    %118 = vector.shape_cast %117 : vector<1x1x8x8xbf16> to vector<8x8xbf16>
    %119 = arith.extf %118 : vector<8x8xbf16> to vector<8x8xf32>
    %120 = arith.addf %119, %116 : vector<8x8xf32>
    %cst_59 = arith.constant dense<0xFF800000> : vector<8xf32>
    %121 = vector.multi_reduction <maximumf>, %120, %cst_59 [1] : vector<8x8xf32> to vector<8xf32>
    %122 = vector.shape_cast %121 : vector<8xf32> to vector<8x1xf32>
    %123 = vector.broadcast %122 : vector<8x1xf32> to vector<8x8xf32>
    %124 = arith.subf %120, %123 : vector<8x8xf32>
    %125 = math.exp %124 : vector<8x8xf32>
    %cst_60 = arith.constant dense<0.000000e+00> : vector<8xf32>
    %126 = vector.multi_reduction <add>, %125, %cst_60 [1] : vector<8x8xf32> to vector<8xf32>
    %127 = vector.shape_cast %126 : vector<8xf32> to vector<8x1xf32>
    %128 = vector.broadcast %127 : vector<8x1xf32> to vector<8x8xf32>
    %129 = arith.divf %125, %128 : vector<8x8xf32>
    %c0_61 = arith.constant 0 : index
    %c3_62 = arith.constant 3 : index
    %c0_63 = arith.constant 0 : index
    %c0_64 = arith.constant 0 : index
    %130 = vector.load %arg6[%c0_61, %c3_62, %c0_63, %c0_64] : memref<1x4x8x8xbf16, #tpu.memory_space<vmem>>, vector<1x1x8x8xbf16>
    %131 = vector.shape_cast %130 : vector<1x1x8x8xbf16> to vector<8x8xbf16>
    %132 = arith.extf %131 : vector<8x8xbf16> to vector<8x8xf32>
    %133 = arith.addf %129, %132 : vector<8x8xf32>
    %cst_65 = arith.constant dense<0xFF800000> : vector<8xf32>
    %134 = vector.multi_reduction <maximumf>, %133, %cst_65 [1] : vector<8x8xf32> to vector<8xf32>
    %135 = vector.shape_cast %134 : vector<8xf32> to vector<8x1xf32>
    %136 = vector.broadcast %135 : vector<8x1xf32> to vector<8x8xf32>
    %137 = arith.subf %133, %136 : vector<8x8xf32>
    %138 = math.exp %137 : vector<8x8xf32>
    %cst_66 = arith.constant dense<0.000000e+00> : vector<8xf32>
    %139 = vector.multi_reduction <add>, %138, %cst_66 [1] : vector<8x8xf32> to vector<8xf32>
    %140 = vector.shape_cast %139 : vector<8xf32> to vector<8x1xf32>
    %141 = vector.broadcast %140 : vector<8x1xf32> to vector<8x8xf32>
    %142 = arith.divf %138, %141 : vector<8x8xf32>
    %143 = arith.truncf %142 : vector<8x8xf32> to vector<8x8xbf16>
    %cst_67 = arith.constant dense<0.000000e+00> : vector<8x16xf32>
    %144 = tpu.matmul %143, %113, %cst_67 {dimension_numbers = #tpu.dot_dimension_numbers<[1], [0], [0], [1], [0, 0, 1, 1], [], []>} : vector<8x8xbf16>, vector<8x16xbf16>, vector<8x16xf32> -> vector<8x16xf32>
    %c0_68 = arith.constant 0 : index
    %c48 = arith.constant 48 : index
    %145 = vector.load %arg8[%c0_68, %c48] : memref<8x64xf32, #tpu.memory_space<vmem>>, vector<8x16xf32>
    tpu.vector_store %arg8[%c0_68, %c48], %144 {strides = array<i32>} : memref<8x64xf32, #tpu.memory_space<vmem>>, vector<8x16xf32>,
    %c0_69 = arith.constant 0 : index
    %c0_70 = arith.constant 0 : index
    %146 = vector.load %arg8[%c0_69, %c0_70] : memref<8x64xf32, #tpu.memory_space<vmem>>, vector<8x64xf32>
    %147 = arith.truncf %146 : vector<8x64xf32> to vector<8x64xbf16>
    %c0_71 = arith.constant 0 : index
    %c0_72 = arith.constant 0 : index
    %c0_73 = arith.constant 0 : index
    %148 = vector.load %arg7[%c0_71, %c0_72, %c0_73] : memref<1x8x64xbf16, #tpu.memory_space<vmem>>, vector<1x8x64xbf16>
    %149 = vector.shape_cast %148 : vector<1x8x64xbf16> to vector<8x64xbf16>
    %150 = vector.shape_cast %147 : vector<8x64xbf16> to vector<1x8x64xbf16>
    tpu.vector_store %arg7[%c0_71, %c0_72, %c0_73], %150 {strides = array<i32>} : memref<1x8x64xbf16, #tpu.memory_space<vmem>>, vector<1x8x64xbf16>,
    return
  }
  func.func @transform_0(%arg0: i32, %arg1: i32) -> (i32, i32, i32) {
    %c0_i32 = arith.constant 0 : i32
    %c0_i32_0 = arith.constant 0 : i32
    return %arg0, %arg1, %c0_i32 : i32, i32, i32
  }
  func.func @transform_1(%arg0: i32, %arg1: i32) -> (i32, i32, i32) {
    %c0_i32 = arith.constant 0 : i32
    %c0_i32_0 = arith.constant 0 : i32
    %c0_i32_1 = arith.constant 0 : i32
    return %arg0, %c0_i32, %c0_i32_0 : i32, i32, i32
  }
  func.func @transform_2(%arg0: i32, %arg1: i32) -> (i32, i32, i32) {
    %c0_i32 = arith.constant 0 : i32
    %c0_i32_0 = arith.constant 0 : i32
    %c0_i32_1 = arith.constant 0 : i32
    return %arg0, %c0_i32, %c0_i32_0 : i32, i32, i32
  }
  func.func @transform_3(%arg0: i32, %arg1: i32) -> (i32, i32, i32, i32) {
    %c0_i32 = arith.constant 0 : i32
    %c0_i32_0 = arith.constant 0 : i32
    %c0_i32_1 = arith.constant 0 : i32
    return %arg0, %c0_i32, %arg1, %c0_i32_0 : i32, i32, i32, i32
  }
  func.func @transform_4(%arg0: i32, %arg1: i32) -> (i32, i32, i32, i32) {
    %c0_i32 = arith.constant 0 : i32
    %c0_i32_0 = arith.constant 0 : i32
    %c0_i32_1 = arith.constant 0 : i32
    return %arg0, %c0_i32, %arg1, %c0_i32_0 : i32, i32, i32, i32
  }
  func.func @transform_5(%arg0: i32, %arg1: i32) -> (i32, i32, i32) {
    %c0_i32 = arith.constant 0 : i32
    %c0_i32_0 = arith.constant 0 : i32
    return %arg0, %arg1, %c0_i32 : i32, i32, i32
  }
}

module attributes {stable_mosaic.version = 11 : i64} {
  func.func @_linear_kernel(%arg0: i32, %arg1: memref<16x64xbf16, #tpu.memory_space<vmem>>, %arg2: memref<64x32xf32, #tpu.memory_space<vmem>>, %arg3: memref<1x32xf32, #tpu.memory_space<vmem>>, %arg4: memref<16x32xf32, #tpu.memory_space<vmem>>) attributes {dimension_semantics = [#tpu.dimension_semantics<parallel>], iteration_bounds = array<i64: 1>, scalar_prefetch = 0 : i64, scratch_operands = 0 : i64, tpu.core_type = #tpu.core_type<tc>, window_params = [{transform_indices = @transform_0, window_bounds = array<i64: 16, 64>}, {pipeline_mode = #tpu.pipeline_mode<synchronous>, transform_indices = @transform_1, window_bounds = array<i64: 64, 32>}, {pipeline_mode = #tpu.pipeline_mode<synchronous>, transform_indices = @transform_2, window_bounds = array<i64: 1, 32>}, {transform_indices = @transform_3, window_bounds = array<i64: 16, 32>}]} {
    %c0 = arith.constant 0 : index
    %c0_0 = arith.constant 0 : index
    %0 = vector.load %arg1[%c0, %c0_0] : memref<16x64xbf16, #tpu.memory_space<vmem>>, vector<16x64xbf16>
    %c0_1 = arith.constant 0 : index
    %c0_2 = arith.constant 0 : index
    %1 = vector.load %arg2[%c0_1, %c0_2] : memref<64x32xf32, #tpu.memory_space<vmem>>, vector<64x32xf32>
    %c0_3 = arith.constant 0 : index
    %c0_4 = arith.constant 0 : index
    %2 = vector.load %arg3[%c0_3, %c0_4] : memref<1x32xf32, #tpu.memory_space<vmem>>, vector<1x32xf32>
    %cst = arith.constant dense<0.000000e+00> : vector<16x32xf32>
    %3 = tpu.matmul %0, %1, %cst {dimension_numbers = #tpu.dot_dimension_numbers<[1], [0], [0], [1], [0, 0, 1, 1], [], []>} : vector<16x64xbf16>, vector<64x32xf32>, vector<16x32xf32> -> vector<16x32xf32>
    %4 = vector.broadcast %2 : vector<1x32xf32> to vector<16x32xf32>
    %5 = arith.addf %3, %4 : vector<16x32xf32>
    %c0_5 = arith.constant 0 : index
    %c0_6 = arith.constant 0 : index
    %6 = vector.load %arg4[%c0_5, %c0_6] : memref<16x32xf32, #tpu.memory_space<vmem>>, vector<16x32xf32>
    tpu.vector_store %arg4[%c0_5, %c0_6], %5 {strides = array<i32>} : memref<16x32xf32, #tpu.memory_space<vmem>>, vector<16x32xf32>,
    return
  }
  func.func @transform_0(%arg0: i32) -> (i32, i32) {
    %c0_i32 = arith.constant 0 : i32
    %c0_i32_0 = arith.constant 0 : i32
    return %arg0, %c0_i32 : i32, i32
  }
  func.func @transform_1(%arg0: i32) -> (i32, i32) {
    %c0_i32 = arith.constant 0 : i32
    %c0_i32_0 = arith.constant 0 : i32
    %c0_i32_1 = arith.constant 0 : i32
    return %c0_i32, %c0_i32_0 : i32, i32
  }
  func.func @transform_2(%arg0: i32) -> (i32, i32) {
    %c0_i32 = arith.constant 0 : i32
    %c0_i32_0 = arith.constant 0 : i32
    %c0_i32_1 = arith.constant 0 : i32
    return %c0_i32, %c0_i32_0 : i32, i32
  }
  func.func @transform_3(%arg0: i32) -> (i32, i32) {
    %c0_i32 = arith.constant 0 : i32
    %c0_i32_0 = arith.constant 0 : i32
    return %arg0, %c0_i32 : i32, i32
  }
}

</mosaic_0001>

<bundles_post_ra>
// kernel: run.5
= control target key start
LH: loop header
LB: loop body
LE: loop exit
PB: predicated region body
PF: predicated region fallthrough
CT: control target
= control target key end

     0   :  { %8 = vsyncpa [#allocation3], 0  ;;  %s198_s12 = smov [#allocation2]   ;;  %s254_s0 = inlined_call_operand.hbm [shape: f32[16,32], index: 0, kind: input, shape index: {}]   ;;  %s255_s1 = inlined_call_operand.vmem [shape: f32[32,64], index: 1, kind: input, shape index: {}]   ;;  %s256_s2 = inlined_call_operand.vmem [shape: f32[1,64], index: 2, kind: input, shape index: {}]   ;;  %s257_s3 = inlined_call_operand.vmem [shape: bf16[16,64], index: 3, kind: output, shape index: {}]  }
   0x1   :  { %s14_s13 = sshll.u32 %s198_s12, 4  ;;  %s174_s16 = scalar_lea.hbm %s254_s0, 256  ;;  %s15_s13 = int_to_ptr.vmem [resolvable:$true] %s14_s13 }
   0x2   :  { %p175_p0 = scmp.ne.s32.totalorder %s254_s0, %s174_s16  ;;  %p178_p1 = scmp.lt.u32.totalorder %s174_s16, %s254_s0 }
   0x4   :  { %p180_p2 = pnand %p178_p1, %p175_p0 }
   0x6   :  { %183 = shalt.err (!%p180_p2)
}
   0x7   :  { %s184_s21 = scalar_lea.vmem %s15_s13, 256  ;;  %p189_p4 = scmp.lt.s32.totalorder %s15_s13, %s15_s13 }
   0x8   :  { %p185_p3 = scmp.ne.s32.totalorder %s15_s13, %s184_s21  ;;  %p190_p5 = scmp.lt.s32.totalorder %s184_s21, %s184_s21 }
   0xa   :  { %p191_p6 = por %p190_p5, %p189_p4 }
   0xc   :  { %p192_p7 = pnand %p191_p6, %p185_p3 }
   0xe   :  { %195 = shalt.err (!%p192_p7)
}
   0xf   :  { %s199_s22 = smov 128   ;;  %s200_s23 = smov 8  }
  0x10   :  { %20 = dma.hbm_to_vmem [thread:$0]  %s254_s0, 256, %s15_s13, [#allocation3], %s199_s22, %s199_s22, %s200_s23  }
  0x11   :  { %196 = dma.done.wait [#allocation3], 256  }
  0x12   :  { %197 = vsyncadd [#allocation3], 4294967040  ;;  %vm41_vm0 = vcmask 261120   ;;  %v30_v0 = vld [vmem:[%s255_s1] sm:$0xff]  ;;  %v31_v1 = vld [vmem:[%s255_s1 + $0x8] sm:$0xff]  ;;  %vm131_vm1 = vcmask 519168  }
  0x13   :  { %v32_v2 = vld [vmem:[%s255_s1 + $0x10] sm:$0xff]  ;;  %v163_v3 = vpack.c.bf16 %v31_v1, %v30_v0  ;;  %v33_v4 = vld [vmem:[%s255_s1 + $0x18] sm:$0xff]  ;;  %v28_v5 = vld [vmem:[#allocation2] sm:$0xff] }
  0x14   :  { %v167_v6 = vpack.c.bf16 %v33_v4, %v32_v2  ;;  %160 = vmatprep.mubr.msk.f32.mxu0 %vm41_vm0, %v28_v5  ;;  %v29_v7 = vld [vmem:[#allocation2 + $0x8] sm:$0xff]  ;;  %v139_v8 = vld [vmem:[%s256_s2] ss:$0 sm:$0xff] }
  0x15   :  { %164 = vmatprep.subr.bf16.mxu0 %v163_v3 }
  0x16   :  { %166 = vmatpush3.bf16.msra.mxu0 %v163_v3 }
  0x17   :  { %168 = vmatprep.subr.bf16.mxu0 %v167_v6 }
  0x1a   :  { %170 = vmatpush3.bf16.msra.mxu0 %v167_v6 }
  0x1d   :  { %161 = vmatmul.mubr.msk.f32.vlgmr.msra.gmra.mrb[0].mxu0 %vm41_vm0, %v29_v7 }
  0xf0   :  { %v162_v9 = vpop.f32.mrb[0].mxu0 }
  0xf1   :  { %v120_v10 = vadd.f32 %v162_v9, %v139_v8  ;;  %v114_v11 = vpop.f32.mrb[1].mxu0 }
  0xf2   :  { %v115_v12 = vadd.f32 %v139_v8, %v114_v11 }
  0xf3   :  { %v145_v13 = vpack.c.bf16 %v120_v10, %v120_v10 }
  0xf4   :  { %v144_v14 = vpack.c.bf16 %v115_v12, %v115_v12 }
  0xf5   :  { %133 = vst.msk [vmem:[%s257_s3 + $0x4] sm:$0xf] %vm131_vm1, %v145_v13 }
  0xf6   :  { %132 = vst.msk [vmem:[%s257_s3] sm:$0xf] %vm131_vm1, %v144_v14 }
  0xf7   :  { %138 = vsyncpa [#allocation3], 1 }

// kernel: run.6
= control target key start
LH: loop header
LB: loop body
LE: loop exit
PB: predicated region body
PF: predicated region fallthrough
CT: control target
= control target key end

     0   :  { %vm27_vm0 = vcmask 261120   ;;  %vm117_vm1 = vcmask 519168   ;;  %s203_s1 = inlined_call_operand.vmem [shape: f32[32,64], index: 1, kind: input, shape index: {}]   ;;  %s204_s0 = inlined_call_operand.vmem [shape: f32[16,32], index: 0, kind: input, shape index: {}]   ;;  %s205_s2 = inlined_call_operand.vmem [shape: f32[1,64], index: 2, kind: input, shape index: {}]   ;;  %s206_s3 = inlined_call_operand.vmem [shape: bf16[16,64], index: 3, kind: output, shape index: {}]  }
   0x1   :  { %v16_v0 = vld [vmem:[%s203_s1] sm:$0xff]  ;;  %v17_v1 = vld [vmem:[%s203_s1 + $0x8] sm:$0xff]  ;;  %v18_v2 = vld [vmem:[%s203_s1 + $0x10] sm:$0xff] }
   0x2   :  { %v148_v3 = vpack.c.bf16 %v17_v1, %v16_v0  ;;  %v19_v4 = vld [vmem:[%s203_s1 + $0x18] sm:$0xff]  ;;  %v14_v5 = vld [vmem:[%s204_s0] sm:$0xff]  ;;  %v15_v7 = vld [vmem:[%s204_s0 + $0x8] sm:$0xff] }
   0x3   :  { %v152_v6 = vpack.c.bf16 %v19_v4, %v18_v2  ;;  %145 = vmatprep.mubr.msk.f32.mxu0 %vm27_vm0, %v14_v5  ;;  %v124_v8 = vld [vmem:[%s205_s2] ss:$0 sm:$0xff] }
   0x4   :  { %149 = vmatprep.subr.bf16.mxu0 %v148_v3 }
   0x5   :  { %151 = vmatpush3.bf16.msra.mxu0 %v148_v3 }
   0x6   :  { %153 = vmatprep.subr.bf16.mxu0 %v152_v6 }
   0x9   :  { %155 = vmatpush3.bf16.msra.mxu0 %v152_v6 }
   0xc   :  { %146 = vmatmul.mubr.msk.f32.vlgmr.msra.gmra.mrb[0].mxu0 %vm27_vm0, %v15_v7 }
  0xdf   :  { %v147_v9 = vpop.f32.mrb[0].mxu0 }
  0xe0   :  { %v106_v10 = vadd.f32 %v147_v9, %v124_v8  ;;  %v100_v11 = vpop.f32.mrb[1].mxu0 }
  0xe1   :  { %v101_v12 = vadd.f32 %v124_v8, %v100_v11 }
  0xe2   :  { %v130_v13 = vpack.c.bf16 %v106_v10, %v106_v10 }
  0xe3   :  { %v129_v14 = vpack.c.bf16 %v101_v12, %v101_v12 }
  0xe4   :  { %119 = vst.msk [vmem:[%s206_s3 + $0x4] sm:$0xf] %vm117_vm1, %v130_v13 }
  0xe5   :  { %118 = vst.msk [vmem:[%s206_s3] sm:$0xf] %vm117_vm1, %v129_v14 }

// kernel: run.9
= control target key start
LH: loop header
LB: loop body
LE: loop exit
PB: predicated region body
PF: predicated region fallthrough
CT: control target
= control target key end

     0   :  { %v209_v3 = vmov 0.0|0.0   ;;  %vm210_vm0 = vmmov 0   ;;  %v211_v6 = vmov 0.0   ;;  %s277_s0 = inlined_call_operand.vmem [shape: bf16[16,64], index: 0, kind: input, shape index: {}]   ;;  %s278_s1 = inlined_call_operand.vmem [shape: f32[64,32], index: 1, kind: input, shape index: {}]   ;;  %s279_s2 = inlined_call_operand.vmem [shape: f32[1,32], index: 2, kind: input, shape index: {}]   ;;  %s280_s3 = inlined_call_operand.hbm [shape: f32[16,32], index: 3, kind: output, shape index: {}]  }
   0x1   :  { %v18_v0 = vld [vmem:[%s278_s1] sm:$0xff]  ;;  %v19_v1 = vld [vmem:[%s278_s1 + $0x8] sm:$0xff]  ;;  %v20_v2 = vld [vmem:[%s278_s1 + $0x10] sm:$0xff]  ;;  %166 = vmatprep.subr.bf16.mxu0 %v209_v3  ;;  %162 = vmatprep.mubr.msk.bf16.mxu0 %vm210_vm0, %v211_v6 }
   0x2   :  { %v167_v4 = vpack.c.bf16 %v19_v1, %v18_v0  ;;  %v21_v5 = vld [vmem:[%s278_s1 + $0x18] sm:$0xff]  ;;  %v22_v8 = vld [vmem:[%s278_s1 + $0x20] sm:$0xff]  ;;  %v23_v9 = vld [vmem:[%s278_s1 + $0x28] sm:$0xff] }
   0x3   :  { %v170_v7 = vpack.c.bf16 %v21_v5, %v20_v2 }
   0x4   :  { %168 = vmatpush3.bf16.msra.mxu0 %v167_v4 }
   0x5   :  { %169 = vmatprep.subr.bf16.mxu0 %v209_v3 }
   0x6   :  { %8 = vsyncpa [#allocation3], 0  ;;  %v173_v10 = vpack.c.bf16 %v23_v9, %v22_v8  ;;  %v24_v11 = vld [vmem:[%s278_s1 + $0x30] sm:$0xff]  ;;  %v25_v12 = vld [vmem:[%s278_s1 + $0x38] sm:$0xff]  ;;  %vm38_vm1 = vcmask 523264   ;;  %s212_s5 = smov [#allocation2]  }
   0x7   :  { %v176_v13 = vpack.c.bf16 %v25_v12, %v24_v11  ;;  %v184_v14 = vld [vmem:[%s277_s0] sm:$0xff]   ;;  %s123_s6 = sshll.u32 %s212_s5, 4  ;;  %vm115_vm2 = vcmask 261120   ;;  %s124_s6 = int_to_ptr.vmem [resolvable:$true] %s123_s6 }
   0x8   :  { %171 = vmatpush3.bf16.msra.mxu0 %v170_v7  ;;  %v134_v15 = vld [vmem:[%s279_s2] ss:$0 sm:$0xff]  ;;  %s185_s0 = scalar_lea.vmem %s124_s6, 256  ;;  %p190_p1 = scmp.lt.s32.totalorder %s124_s6, %s124_s6 }
   0x9   :  { %172 = vmatprep.subr.bf16.mxu0 %v209_v3  ;;  %p186_p0 = scmp.ne.s32.totalorder %s124_s6, %s185_s0  ;;  %p191_p2 = scmp.lt.s32.totalorder %s185_s0, %s185_s0 }
   0xb   :  { %p192_p3 = por %p191_p2, %p190_p1 }
   0xc   :  { %174 = vmatpush3.bf16.msra.mxu0 %v173_v10 }
   0xd   :  { %175 = vmatprep.subr.bf16.mxu0 %v209_v3  ;;  %p193_p4 = pnand %p192_p3, %p186_p0 }
  0x10   :  { %177 = vmatpush3.bf16.msra.mxu0 %v176_v13 }
  0x13   :  { %163 = vmatmul.mubr.msk.bf16.vlgmr.msra.gmra.mrb[0].mxu0 %vm38_vm1, %v184_v14 }
  0xe6   :  { %v108_v16 = vpop.f32.mrb[0].mxu0 }
  0xe7   :  { %v109_v17 = vadd.f32 %v134_v15, %v108_v16  ;;  %v164_v18 = vpop.f32.mrb[1].mxu0 }
  0xe8   :  { %v111_v19 = vpop.f32.mrb[2].mxu0 }
  0xe9   :  { %116 = vst.msk [vmem:[#allocation2] sm:$0xff] %vm115_vm2, %v109_v17  ;;  %v112_v20 = vadd.f32 %v134_v15, %v111_v19  ;;  %v165_v21 = vpop.f32.mrb[3].mxu0 }
  0xeb   :  { %117 = vst.msk [vmem:[#allocation2 + $0x8] sm:$0xff] %vm115_vm2, %v112_v20 }
  0xec   :  { %196 = shalt.err (!%p193_p4)
}
  0xed   :  { %s197_s7 = scalar_lea.hbm %s280_s3, 256 }
  0xee   :  { %p198_p5 = scmp.ne.s32.totalorder %s280_s3, %s197_s7  ;;  %p201_p6 = scmp.lt.u32.totalorder %s197_s7, %s280_s3 }
  0xf0   :  { %p203_p7 = pnand %p201_p6, %p198_p5 }
  0xf2   :  { %206 = shalt.err (!%p203_p7)
}
  0xf3   :  { %s213_s12 = smov 128   ;;  %s214_s13 = smov 8  }
  0xf4   :  { %129 = dma.vmem_to_hbm [thread:$0]  %s124_s6, 256, %s280_s3, [#allocation3], %s213_s12, %s213_s12, %s214_s13  }
  0xf5   :  { %207 = dma.done.wait [#allocation3], 256  }
  0xf6   :  { %208 = vsyncadd [#allocation3], 4294967040 }
  0xf7   :  { %133 = vsyncpa [#allocation3], 1 }

// kernel: run.8
= control target key start
LH: loop header
LB: loop body
LE: loop exit
PB: predicated region body
PF: predicated region fallthrough
CT: control target
= control target key end

     0   :  { %s1259_s18 = smov 0   ;;  %s1261_s19 = smov 0   ;;  %s1401_s0 = inlined_call_operand.vmem [shape: bf16[2,8,64], index: 0, kind: input, shape index: {}]   ;;  %s1402_s1 = inlined_call_operand.vmem [shape: bf16[2,8,64], index: 1, kind: input, shape index: {}]   ;;  %s1403_s2 = inlined_call_operand.vmem [shape: bf16[2,8,64], index: 2, kind: input, shape index: {}]   ;;  %s1404_s3 = inlined_call_operand.vmem [shape: bf16[2,4,8,8], index: 3, kind: input, shape index: {}]   ;;  %s1405_s4 = inlined_call_operand.vmem [shape: bf16[2,4,8,8], index: 4, kind: input, shape index: {}]   ;;  %s1406_s5 = inlined_call_operand.vmem [shape: bf16[2,8,64], index: 5, kind: output, shape index: {}]  }
   0x1   :  { %s1263_s20 = smov 0  }
   0x2 LB: > { %s27_s21 = sadd.s32 1, %s1215_s19  ;;  %p1036_p0 = scmp.ge.s32.totalorder %s1219_s20, 1  ;;  %s1219_s20 = sphi %s1263_s20, %s15_s20   ;;  %s1215_s19 = sphi %s1261_s19, %s1408_s19   ;;  %s1211_s18 = sphi %s1259_s18, %s1407_s18  }
   0x3   : > { %p29_p1 = scmp.ge.s32.totalorder %s27_s21, 2  ;;  %p253_p2 = scmp.lt.s32.totalorder %s1219_s20, 3 }
   0x5   : > { %s1410_s21 = smov (%p29_p1, %s27_s21), 0  ;;  %p254_p3 = pnand %p1036_p0, %p253_p2 }
   0x6   : > { %p309_p4 = scmp.lt.s32.totalorder (!%p254_p3), %s1211_s18, 1  ;;  %v1221_v0 = vmov (!%p254_p3), 0.0   ;;  %vm1222_vm0 = vmmov (!%p254_p3), 0   ;;  %vm351_vm1 = vcmask (!%p254_p3), 130048   ;;  %vm402_vm2 = vcmask (!%p254_p3), 64512   ;;  %s1223_s11 = smov (!%p254_p3), 112  }
   0x7   : > { %257 = sbr.rel (%p254_p3) target bundleno = 2121 (0x849), region = 40  ;;  %1082 = vmatprep.subr.bf16.mxu0 (!%p254_p3), %v1221_v0  ;;  %1084 = vmatprep.mubr.msk.bf16.mxu0 (!%p254_p3), %vm1222_vm0, %v1221_v0  ;;  %s1224_s12 = smov (!%p254_p3), 80   ;;  %vm432_vm3 = vcmask (!%p254_p3), 1043456   ;;  %vm620_vm4 = vcmask (!%p254_p3), 261248   ;;  %vm756_vm5 = vcmask (!%p254_p3), 392448   ;;  %vm892_vm6 = vcmask (!%p254_p3), 523648  }
   0x8   : > { %1088 = vmatprep.subr.bf16.mxu1 (!%p254_p3), %v1221_v0  ;;  %1090 = vmatprep.mubr.msk.bf16.mxu1 (!%p254_p3), %vm1222_vm0, %v1221_v0  ;;  %s1225_s16 = smov (!%p254_p3), 96   ;;  %s1226_s17 = smov (!%p254_p3), 16   ;;  %vm896_vm7 = vcmask (!%p254_p3), 519168  }
   0x9   : > { %s1228_s23 = smov (!%p254_p3), 48  }
   0xe   : > { %s1412_s18 = smov (!%p309_p4, %s1211_s18), 1 }
   0xf   : > { %s1286_s22 = sshll.u32 %s1412_s18, 2  ;;  %s1064_s29 = sshll.u32 %s1412_s18, 4 }
  0x10   : > { %s319_s25 = scalar_lea.vmem %s1402_s1, %s1286_s22  ;;  %s315_s28 = scalar_lea.vmem %s1401_s0, %s1286_s22 }
  0x11   : > { %v349_v1 = vld [vmem:[%s319_s25] sm:$0xf]  ;;  %s1305_s7 = scalar_lea.vmem %s1404_s3, %s1064_s29  ;;  %s1316_s10 = scalar_lea.vmem %s1405_s4, %s1064_s29 }
  0x12   : > { %v356_v2 = vsel %vm351_vm1, %v349_v1, 0  ;;  %v348_v3 = vld [vmem:[%s315_s28] sm:$0xf]  ;;  %v1048_v25 = vcombine.low %v349_v1, %v349_v1  ;;  %s323_s15 = scalar_lea.vmem %s1403_s2, %s1286_s22  ;;  %v1055_v58 = vld [vmem:[%s1305_s7 + $0x8] sm:$0xff]   ;;  %s1227_s18 = smov 32  }
  0x13   : > { %1083 = vmatpush3.bf16.xpose.msra.mxu0 %v356_v2  ;;  %v1308_v4 = vld [vmem:[%s1305_s7] sm:$0xff]   ;;  %v1047_v31 = vcombine.low %v348_v3, %v348_v3  ;;  %v675_v60 = vunpack.c.l.bf16 %v1055_v58  ;;  %s346_s26 = scalar_lea.vmem %s1406_s5, %s1286_s22 }
  0x14   : > { %1100 = vmatprep.subr.bf16.mxu0 %v1221_v0  ;;  %v400_v5 = vunpack.c.l.bf16 %v1308_v4  ;;  %v1319_v19 = vld [vmem:[%s1316_s10] sm:$0xff]   ;;  %v536_v51 = vunpack.c.h.bf16 %v1308_v4  ;;  %v811_v4 = vunpack.c.h.bf16 %v1055_v58 }
  0x15   : > { %v415_v20 = vunpack.c.l.bf16 %v1319_v19  ;;  %v1330_v32 = vld [vmem:[%s323_s15] sm:$0xf] }
  0x16   : > { %v434_v33 = vsel %vm432_vm3, %v1330_v32, 0  ;;  %v1052_v58 = vcombine.low %v1330_v32, %v1330_v32 }
  0x17   : > { %1089 = vmatpush3.bf16.msra.mxu1 %v434_v33 }
  0x18   : > { %1094 = vmatprep.subr.bf16.mxu1 %v1221_v0 }
  0x1a   : > { %1085 = vmatmul.mubr.msk.bf16.vlgmr.msra.gmra.mrb[0].mxu0 %vm351_vm1, %v348_v3 }
  0x1b   : > { %1102 = vmatprep.mubr.msk.bf16.mxu0 %vm1222_vm0, %v1221_v0 }
  0xed   : > { %v392_v6 = vpop.f32.mrb[0].mxu0 }
  0xee   : > { %v398_v7 = vmul.f32 0.25, %v392_v6  ;;  %v1086_v8 = vpop.f32.mrb[1].mxu0 }
  0xef   : > { %v395_v9 = vpop.f32.mrb[2].mxu0 }
  0xf0   : > { %v1087_v10 = vpop.f32.mrb[3].mxu0  ;;  %v401_v11 = vadd.f32 %v400_v5, %v398_v7 }
  0xf2   : > { %v403_v12 = vsel %vm402_vm2, %v401_v11, -inf }
  0xf3   : > { %404 = vmax.xlane.f32.xlu0 %v403_v12 }
 0x180   : > { %v405_v13 = vpop.xlane.xlu0 %404 }
 0x181   : > { %v406_v14 = vsub.f32 %v401_v11, %v405_v13 }
 0x183   : > { %v407_v15 = vmul.f32 1.442695, %v406_v14 }
 0x185   : > { %1165 = vpow2.f32 %v407_v15 }
 0x18f   : > { %v1166_v16 = vpop.eup %1165 }
 0x190   : > { %v409_v17 = vsel %vm402_vm2, %v1166_v16, 0.0 }
 0x191   : > { %410 = vadd.xlane.f32.xlu0 %v409_v17 }
 0x1a7   : > { %485 = vrot.lane.b32.xlu0 %v1048_v25, %s1223_s11 }
 0x1ab   : > { %760 = vrot.lane.b32.xlu0 %v1048_v25, %s1224_s12 }
 0x21e   : > { %v411_v18 = vpop.xlane.xlu0 %410 }
 0x21f   : > { %1167 = vrcp.f32 %v411_v18 }
 0x222   : > { %v486_v36 = vpop.permute.xlu0 %485 }
 0x223   : > { %v491_v39 = vsel %vm351_vm1, %v486_v36, 0  ;;  %v1056_v36 = vld [vmem:[%s1316_s10 + $0x8] sm:$0xff]  }
 0x226   : > { %v761_v43 = vpop.permute.xlu0 %760 }
 0x227   : > { %v766_v45 = vsel %vm351_vm1, %v761_v43, 0 }
 0x229   : > { %v1168_v21 = vpop.eup %1167 }
 0x22a   : > { %v413_v22 = vmul.f32 %v1168_v21, %v1166_v16 }
 0x22c   : > { %v416_v23 = vadd.f32 %v415_v20, %v413_v22 }
 0x22e   : > { %v417_v24 = vsel %vm402_vm2, %v416_v23, -inf }
 0x22f   : > { %418 = vmax.xlane.f32.xlu1 %v417_v24 }
 0x2bc   : > { %v419_v26 = vpop.xlane.xlu1 %418 }
 0x2bd   : > { %v420_v27 = vsub.f32 %v416_v23, %v419_v26 }
 0x2bf   : > { %v421_v28 = vmul.f32 1.442695, %v420_v27 }
 0x2c1   : > { %1169 = vpow2.f32 %v421_v28 }
 0x2cb   : > { %v1170_v29 = vpop.eup %1169 }
 0x2cc   : > { %v423_v30 = vsel %vm402_vm2, %v1170_v29, 0.0 }
 0x2cd   : > { %424 = vadd.xlane.f32.xlu1 %v423_v30 }
 0x2de   : > { %480 = vrot.lane.b32.xlu1 %v1047_v31, %s1223_s11 }
 0x2e2   : > { %624 = vrot.lane.b32.xlu1 %v1048_v25, %s1225_s16 }
 0x2e6   : > { %622 = vrot.lane.b32.xlu1 %v1047_v31, %s1225_s16 }
 0x2ea   : > { %758 = vrot.lane.b32.xlu1 %v1047_v31, %s1224_s12  ;;  %v551_v31 = vunpack.c.h.bf16 %v1319_v19 }
 0x35a   : > { %v425_v34 = vpop.xlane.xlu1 %424 }
 0x35b   : > { %1171 = vrcp.f32 %v425_v34 }
 0x35e   : > { %v481_v38 = vpop.permute.xlu1 %480 }
 0x362   : > { %v625_v41 = vpop.permute.xlu1 %624 }
 0x363   : > { %v630_v42 = vsel %vm351_vm1, %v625_v41, 0 }
 0x365   : > { %v1172_v35 = vpop.eup %1171 }
 0x366   : > { %v427_v37 = vmul.f32 %v1172_v35, %v1170_v29  ;;  %v623_v44 = vpop.permute.xlu1 %622 }
 0x368   : > { %v428_v40 = vpack.c.bf16 %v427_v37, %v427_v37 }
 0x36a   : > { %1091 = vmatmul.mubr.msk.bf16.vlgmr.msra.gmra.mrb[0].mxu1 %vm402_vm2, %v428_v40  ;;  %v759_v46 = vpop.permute.xlu1 %758 }
 0x36b   : > { %1095 = vmatpush3.bf16.xpose.msra.mxu1 %v491_v39  ;;  %1096 = vmatprep.mubr.msk.bf16.mxu1 %vm1222_vm0, %v1221_v0  ;;  %v690_v39 = vunpack.c.l.bf16 %v1056_v36 }
 0x36c   : > { %1106 = vmatprep.subr.bf16.mxu1 %v1221_v0 }
 0x372   : > { %1097 = vmatmul.mubr.msk.bf16.vlgmr.msra.gmra.mrb[4].mxu1 %vm351_vm1, %v481_v38 }
 0x373   : > { %1107 = vmatpush3.bf16.xpose.msra.mxu1 %v630_v42  ;;  %1108 = vmatprep.mubr.msk.bf16.mxu1 %vm1222_vm0, %v1221_v0 }
 0x374   : > { %1118 = vmatprep.subr.bf16.mxu1 %v1221_v0 }
 0x37a   : > { %1109 = vmatmul.mubr.msk.bf16.vlgmr.msra.gmra.mrb[8].mxu1 %vm351_vm1, %v623_v44  ;;  %v826_v44 = vunpack.c.h.bf16 %v1056_v36 }
 0x37b   : > { %1119 = vmatpush3.bf16.xpose.msra.mxu1 %v766_v45  ;;  %1120 = vmatprep.mubr.msk.bf16.mxu1 %vm1222_vm0, %v1221_v0 }
 0x382   : > { %1121 = vmatmul.mubr.msk.bf16.vlgmr.msra.gmra.mrb[12].mxu1 %vm351_vm1, %v759_v46 }
 0x43d   : > { %v470_v47 = vpop.f32.mrb[0].mxu1 }
 0x43e   : > { %476 = vst.msk [vmem:[#allocation2] sm:$0xff] %vm351_vm1, %v470_v47  ;;  %v1092_v48 = vpop.f32.mrb[1].mxu1 }
 0x43f   : > { %v473_v49 = vpop.f32.mrb[2].mxu1 }
 0x440   : > { %v1093_v50 = vpop.f32.mrb[3].mxu1 }
 0x445   : > { %v527_v52 = vpop.f32.mrb[4].mxu1 }
 0x446   : > { %v533_v53 = vmul.f32 0.25, %v527_v52  ;;  %v1098_v54 = vpop.f32.mrb[5].mxu1 }
 0x447   : > { %v530_v55 = vpop.f32.mrb[6].mxu1 }
 0x448   : > { %v1099_v56 = vpop.f32.mrb[7].mxu1  ;;  %v537_v57 = vadd.f32 %v536_v51, %v533_v53 }
 0x44a   : > { %v538_v59 = vsel %vm402_vm2, %v537_v57, -inf }
 0x44b   : > { %539 = vmax.xlane.f32.xlu0 %v538_v59 }
 0x44d   : > { %v666_v61 = vpop.f32.mrb[8].mxu1 }
 0x44e   : > { %v672_v62 = vmul.f32 0.25, %v666_v61  ;;  %v1110_v63 = vpop.f32.mrb[9].mxu1 }
 0x44f   : > { %v669_v1 = vpop.f32.mrb[10].mxu1 }
 0x450   : > { %v676_v2 = vadd.f32 %v675_v60, %v672_v62  ;;  %v1111_v3 = vpop.f32.mrb[11].mxu1 }
 0x452   : > { %v677_v5 = vsel %vm402_vm2, %v676_v2, -inf }
 0x453   : > { %678 = vmax.xlane.f32.xlu1 %v677_v5 }
 0x455   : > { %v802_v6 = vpop.f32.mrb[12].mxu1 }
 0x456   : > { %v808_v7 = vmul.f32 0.25, %v802_v6  ;;  %v1122_v8 = vpop.f32.mrb[13].mxu1 }
 0x457   : > { %v805_v9 = vpop.f32.mrb[14].mxu1 }
 0x458   : > { %v812_v10 = vadd.f32 %v811_v4, %v808_v7  ;;  %v1123_v11 = vpop.f32.mrb[15].mxu1 }
 0x45a   : > { %v813_v12 = vsel %vm402_vm2, %v812_v10, -inf }
 0x45b   : > { %814 = vmax.xlane.f32.xlu0 %v813_v12 }
 0x4d8   : > { %v540_v13 = vpop.xlane.xlu0 %539 }
 0x4d9   : > { %v541_v14 = vsub.f32 %v537_v57, %v540_v13 }
 0x4db   : > { %v542_v15 = vmul.f32 1.442695, %v541_v14 }
 0x4dd   : > { %1173 = vpow2.f32 %v542_v15 }
 0x4e0   : > { %v679_v16 = vpop.xlane.xlu1 %678 }
 0x4e1   : > { %v680_v17 = vsub.f32 %v676_v2, %v679_v16 }
 0x4e3   : > { %v681_v18 = vmul.f32 1.442695, %v680_v17 }
 0x4e5   : > { %1175 = vpow2.f32 %v681_v18 }
 0x4e7   : > { %v1174_v20 = vpop.eup %1173 }
 0x4e8   : > { %v815_v21 = vpop.xlane.xlu0 %814  ;;  %v544_v22 = vsel %vm402_vm2, %v1174_v20, 0.0 }
 0x4e9   : > { %v816_v23 = vsub.f32 %v812_v10, %v815_v21  ;;  %545 = vadd.xlane.f32.xlu0 %v544_v22 }
 0x4eb   : > { %v817_v24 = vmul.f32 1.442695, %v816_v23 }
 0x4ed   : > { %1177 = vpow2.f32 %v817_v24 }
 0x4ef   : > { %v1176_v25 = vpop.eup %1175 }
 0x4f0   : > { %v683_v26 = vsel %vm402_vm2, %v1176_v25, 0.0 }
 0x4f1   : > { %684 = vadd.xlane.f32.xlu0 %v683_v26 }
 0x4f7   : > { %v1178_v27 = vpop.eup %1177 }
 0x4f8   : > { %v819_v28 = vsel %vm402_vm2, %v1178_v27, 0.0 }
 0x4f9   : > { %820 = vadd.xlane.f32.xlu1 %v819_v28 }
 0x576   : > { %v546_v29 = vpop.xlane.xlu0 %545 }
 0x577   : > { %1179 = vrcp.f32 %v546_v29 }
 0x57e   : > { %v685_v30 = vpop.xlane.xlu0 %684 }
 0x57f   : > { %1181 = vrcp.f32 %v685_v30 }
 0x581   : > { %v1180_v33 = vpop.eup %1179 }
 0x582   : > { %v548_v34 = vmul.f32 %v1180_v33, %v1174_v20 }
 0x584   : > { %v552_v35 = vadd.f32 %v551_v31, %v548_v34 }
 0x586   : > { %v821_v37 = vpop.xlane.xlu1 %820  ;;  %v553_v38 = vsel %vm402_vm2, %v552_v35, -inf }
 0x587   : > { %1183 = vrcp.f32 %v821_v37  ;;  %554 = vmax.xlane.f32.xlu0 %v553_v38 }
 0x589   : > { %v1182_v40 = vpop.eup %1181 }
 0x58a   : > { %v687_v41 = vmul.f32 %v1182_v40, %v1176_v25 }
 0x58c   : > { %v691_v42 = vadd.f32 %v690_v39, %v687_v41 }
 0x58e   : > { %v692_v43 = vsel %vm402_vm2, %v691_v42, -inf }
 0x58f   : > { %693 = vmax.xlane.f32.xlu1 %v692_v43 }
 0x591   : > { %v1184_v45 = vpop.eup %1183 }
 0x592   : > { %v823_v46 = vmul.f32 %v1184_v45, %v1178_v27 }
 0x594   : > { %v827_v19 = vadd.f32 %v826_v44, %v823_v46 }
 0x596   : > { %v828_v47 = vsel %vm402_vm2, %v827_v19, -inf }
 0x597   : > { %829 = vmax.xlane.f32.xlu0 %v828_v47 }
 0x614   : > { %v555_v48 = vpop.xlane.xlu0 %554 }
 0x615   : > { %v556_v49 = vsub.f32 %v552_v35, %v555_v48 }
 0x617   : > { %v557_v50 = vmul.f32 1.442695, %v556_v49 }
 0x619   : > { %1185 = vpow2.f32 %v557_v50 }
 0x61c   : > { %v694_v51 = vpop.xlane.xlu1 %693 }
 0x61d   : > { %v695_v52 = vsub.f32 %v691_v42, %v694_v51 }
 0x61f   : > { %v696_v53 = vmul.f32 1.442695, %v695_v52 }
 0x621   : > { %1187 = vpow2.f32 %v696_v53 }
 0x623   : > { %v1186_v54 = vpop.eup %1185 }
 0x624   : > { %v559_v55 = vsel %vm402_vm2, %v1186_v54, 0.0  ;;  %v830_v59 = vpop.xlane.xlu0 %829 }
 0x625   : > { %560 = vadd.xlane.f32.xlu1 %v559_v55  ;;  %v831_v60 = vsub.f32 %v827_v19, %v830_v59 }
 0x627   : > { %v832_v61 = vmul.f32 1.442695, %v831_v60 }
 0x629   : > { %1189 = vpow2.f32 %v832_v61 }
 0x62b   : > { %v1188_v56 = vpop.eup %1187 }
 0x62c   : > { %v698_v57 = vsel %vm402_vm2, %v1188_v56, 0.0 }
 0x62d   : > { %699 = vadd.xlane.f32.xlu0 %v698_v57 }
 0x633   : > { %v1190_v62 = vpop.eup %1189 }
 0x634   : > { %v834_v63 = vsel %vm402_vm2, %v1190_v62, 0.0 }
 0x636   : > { %704 = vrot.lane.b32.xlu1 %v1052_v58, %s1225_s16 }
 0x643   : > { %568 = vrot.lane.b32.xlu0 %v1052_v58, %s1223_s11 }
 0x65a   : > { %835 = vadd.xlane.f32.xlu1 %v834_v63 }
 0x66b   : > { %840 = vrot.lane.b32.xlu1 %v1052_v58, %s1224_s12 }
 0x6b2   : > { %v561_v1 = vpop.xlane.xlu1 %560 }
 0x6b3   : > { %1191 = vrcp.f32 %v561_v1 }
 0x6b6   : > { %v705_v6 = vpop.permute.xlu1 %704 }
 0x6b7   : > { %v710_v8 = vsel %vm432_vm3, %v705_v6, 0 }
 0x6ba   : > { %v700_v2 = vpop.xlane.xlu0 %699 }
 0x6bb   : > { %1193 = vrcp.f32 %v700_v2 }
 0x6bd   : > { %v1192_v3 = vpop.eup %1191 }
 0x6be   : > { %v563_v32 = vmul.f32 %v1192_v3, %v1186_v54  ;;  %v569_v5 = vpop.permute.xlu0 %568 }
 0x6bf   : > { %v574_v4 = vsel %vm432_vm3, %v569_v5, 0 }
 0x6c0   : > { %1101 = vmatpush3.bf16.msra.mxu0 %v574_v4  ;;  %v564_v7 = vpack.c.bf16 %v563_v32, %v563_v32 }
 0x6c1   : > { %1112 = vmatprep.subr.bf16.mxu0 %v1221_v0 }
 0x6c3   : > { %1103 = vmatmul.mubr.msk.bf16.vlgmr.msra.gmra.mrb[4].mxu0 %vm402_vm2, %v564_v7 }
 0x6c4   : > { %1113 = vmatpush3.bf16.msra.mxu0 %v710_v8  ;;  %1114 = vmatprep.mubr.msk.bf16.mxu0 %vm1222_vm0, %v1221_v0 }
 0x6c5   : > { %v1194_v9 = vpop.eup %1193  ;;  %1124 = vmatprep.subr.bf16.mxu0 %v1221_v0 }
 0x6c6   : > { %v702_v10 = vmul.f32 %v1194_v9, %v1188_v56 }
 0x6c8   : > { %v703_v11 = vpack.c.bf16 %v702_v10, %v702_v10 }
 0x6cb   : > { %1115 = vmatmul.mubr.msk.bf16.vlgmr.msra.gmra.mrb[8].mxu0 %vm402_vm2, %v703_v11 }
 0x6cc   : > { %1126 = vmatprep.mubr.msk.bf16.mxu0 %vm1222_vm0, %v1221_v0 }
 0x6e7   : > { %v836_v12 = vpop.xlane.xlu1 %835 }
 0x6e8   : > { %1195 = vrcp.f32 %v836_v12 }
 0x6eb   : > { %v841_v13 = vpop.permute.xlu1 %840 }
 0x6ec   : > { %v846_v14 = vsel %vm432_vm3, %v841_v13, 0 }
 0x6ed   : > { %1125 = vmatpush3.bf16.msra.mxu0 %v846_v14 }
 0x6f2   : > { %v1196_v15 = vpop.eup %1195 }
 0x6f3   : > { %v838_v16 = vmul.f32 %v1196_v15, %v1190_v62 }
 0x6f5   : > { %v839_v17 = vpack.c.bf16 %v838_v16, %v838_v16 }
 0x6f7   : > { %1127 = vmatmul.mubr.msk.bf16.vlgmr.msra.gmra.mrb[12].mxu0 %vm402_vm2, %v839_v17 }
 0x796   : > { %v610_v18 = vpop.f32.mrb[4].mxu0 }
 0x797   : > { %617 = vrot.lane.b32.xlu1 %v610_v18, %s1226_s17  ;;  %v1104_v20 = vpop.f32.mrb[5].mxu0 }
 0x798   : > { %v613_v21 = vpop.f32.mrb[6].mxu0 }
 0x799   : > { %v1105_v22 = vpop.f32.mrb[7].mxu0 }
 0x79e   : > { %v746_v23 = vpop.f32.mrb[8].mxu0 }
 0x79f   : > { %753 = vrot.lane.b32.xlu0 %v746_v23, %s1227_s18  ;;  %v1116_v0 = vpop.f32.mrb[9].mxu0 }
 0x7a0   : > { %v749_v24 = vpop.f32.mrb[10].mxu0 }
 0x7a1   : > { %v1117_v25 = vpop.f32.mrb[11].mxu0 }
 0x7ca   : > { %v882_v26 = vpop.f32.mrb[12].mxu0 }
 0x7cb   : > { %889 = vrot.lane.b32.xlu1 %v882_v26, %s1228_s23  ;;  %v1128_v27 = vpop.f32.mrb[13].mxu0 }
 0x7cc   : > { %v885_v28 = vpop.f32.mrb[14].mxu0 }
 0x7cd   : > { %v1129_v29 = vpop.f32.mrb[15].mxu0 }
 0x809   : > { %v618_v30 = vpop.permute.xlu1 %617 }
 0x80a   : > { %621 = vst.msk [vmem:[#allocation2] sm:$0xff] %vm620_vm4, %v618_v30 }
 0x811   : > { %v754_v31 = vpop.permute.xlu0 %753 }
 0x812   : > { %757 = vst.msk [vmem:[#allocation2] sm:$0xff] %vm756_vm5, %v754_v31 }
 0x83d   : > { %v890_v33 = vpop.permute.xlu1 %889 }
 0x83e   : > { %893 = vst.msk [vmem:[#allocation2] sm:$0xff] %vm892_vm6, %v890_v33 }
 0x845   : > { %v894_v34 = vld [vmem:[#allocation2] sm:$0xff] }
 0x846   : > { %v895_v35 = vpack.c.bf16 %v894_v34, %v894_v34 }
 0x848   : > { %897 = vst.msk [vmem:[%s346_s26] sm:$0xf] %vm896_vm7, %v895_v35 }
 0x849 PF: > { %s15_s20 = sadd.s32 1, %s1219_s20   ;;  %s1407_s18 = smov %s1215_s19 }
 0x84a   : > { %p12_p5 = scmp.ge.s32.totalorder %s15_s20, 4   ;;  %s1408_s19 = smov %s1410_s21 }
 0x84c   :  { %14 = sbr.rel (!%p12_p5) target bundleno = 2 (0x2), region = 88 }

</bundles_post_ra>
